<compile_context>
chip_gen: v6e
topology: v6e:2x2x1
jax: 0.10.0
libtpu: 0.0.40
codegen_flags: <defaults>
</compile_context>

<pallas_src>
import functools

import jax
import jax.numpy as jnp
from jax.experimental import pallas as pl
from jax.experimental.pallas import tpu as pltpu

_LANE = 128
_VMEM_LIMIT_BYTES = 48 * 1024 * 1024   # > v5e(16)/v6e(32) scoped defaults, < v7x 64 MiB physical
_FUSED_MAX_NPAD = 1024                  # small-graph fused path: A <= 2 MiB bf16


def _round_up(x, m):
    return (x + m - 1) // m * m


def _tiles_for(n):
    """(n_pad, tm, tk) for the tiled path.  n_pad rounds to 512 to limit A padding."""
    n_pad = _round_up(n, 512)
    tm = 512
    tk = 1024 if n_pad % 1024 == 0 else 512     # 0.5-1 MiB bf16 A tile
    return n_pad, tm, tk


# --------------------------------------------------------------------------- #
# Kernels
# --------------------------------------------------------------------------- #
def _sage_conv_kernel(a_ref, x_ref, wl_ref, wr_ref, b_ref, out_ref, acc_ref,
                      *, tm, tk, apply_relu):
    """Tiled SAGEConv: partial mean-aggregation + two-dot finalize.

    a_ref : (tm, tk) bf16 A tile            (streamed per grid step)
    x_ref : (n_pad, f_pad) bf16, VMEM-resident (constant index_map)
    """
    i = pl.program_id(0)
    k = pl.program_id(1)

    @pl.when(k == 0)
    def _init():
        acc_ref[...] = jnp.zeros_like(acc_ref)

    # Partial neighbor mean: A[i-tile, k-tile] @ X[k-tile, :] on the MXU.
    xk = x_ref[pl.ds(pl.multiple_of(k * tk, tk), tk), :]
    acc_ref[...] += jnp.dot(a_ref[...], xk, preferred_element_type=jnp.float32)

    @pl.when(k == pl.num_programs(1) - 1)
    def _finalize():
        agg = acc_ref[...].astype(jnp.bfloat16)
        x_root = x_ref[pl.ds(pl.multiple_of(i * tm, tm), tm), :]
        out = jnp.dot(agg, wl_ref[...], preferred_element_type=jnp.float32)
        out = out + jnp.dot(x_root, wr_ref[...], preferred_element_type=jnp.float32)
        out = out + b_ref[...]                       # (1, H) broadcasts over rows
        if apply_relu:
            out = jnp.maximum(out, 0.0)
        out_ref[...] = out.astype(out_ref.dtype)


def _fused_sagenet_kernel(a_ref, x_ref, w1l_ref, w1r_ref, b1_ref,
                          w2l_ref, w2r_ref, b2_ref, out_ref):
    """Whole SAGENet forward (conv1 -> ReLU -> conv2) in VMEM for small graphs."""
    a = a_ref[...]
    x = x_ref[...]

    agg1 = jnp.dot(a, x, preferred_element_type=jnp.float32)
    h = jnp.dot(agg1.astype(jnp.bfloat16), w1l_ref[...],
                preferred_element_type=jnp.float32)
    h = h + jnp.dot(x, w1r_ref[...], preferred_element_type=jnp.float32)
    h = jnp.maximum(h + b1_ref[...], 0.0)
    # F.dropout(p=0.5, training=self.training): identity in eval mode.
    # TODO(synk): training-mode dropout (pltpu PRNG masking) not implemented.
    h_bf = h.astype(jnp.bfloat16)

    agg2 = jnp.dot(a, h_bf, preferred_element_type=jnp.float32)
    out = jnp.dot(agg2.astype(jnp.bfloat16), w2l_ref[...],
                  preferred_element_type=jnp.float32)
    out = out + jnp.dot(h_bf, w2r_ref[...], preferred_element_type=jnp.float32)
    out_ref[...] = out + b2_ref[...]


# --------------------------------------------------------------------------- #
# pallas_call wrappers
# --------------------------------------------------------------------------- #
def sage_conv(a, x, w_l, w_r, b, *, tm, tk, apply_relu, out_dtype):
    """a: (Np, Np) bf16, x: (Np, Fp) bf16, w_l/w_r: (Fp, Hp) bf16, b: (1, Hp) f32."""
    n_pad = a.shape[0]
    f_pad = x.shape[1]
    h_pad = w_l.shape[1]
    grid = (n_pad // tm, n_pad // tk)

    kernel = functools.partial(_sage_conv_kernel, tm=tm, tk=tk, apply_relu=apply_relu)
    return pl.pallas_call(
        kernel,
        out_shape=jax.ShapeDtypeStruct((n_pad, h_pad), out_dtype),
        grid=grid,
        in_specs=[
            pl.BlockSpec((tm, tk), lambda i, k: (i, k)),            # A tile
            pl.BlockSpec((n_pad, f_pad), lambda i, k: (0, 0)),      # X, VMEM-resident
            pl.BlockSpec((f_pad, h_pad), lambda i, k: (0, 0)),      # W_l
            pl.BlockSpec((f_pad, h_pad), lambda i, k: (0, 0)),      # W_r
            pl.BlockSpec((1, h_pad), lambda i, k: (0, 0)),          # bias
        ],
        out_specs=pl.BlockSpec((tm, h_pad), lambda i, k: (i, 0)),
        scratch_shapes=[pltpu.VMEM((tm, f_pad), jnp.float32)],      # aggregation accumulator
        compiler_params=pltpu.CompilerParams(
            dimension_semantics=("parallel", "arbitrary"),
            vmem_limit_bytes=_VMEM_LIMIT_BYTES),
    )(a, x, w_l, w_r, b)


@jax.jit
def _fused_forward(prep, x_pad, a_pad):
    n_pad, f_pad = x_pad.shape
    h_pad = prep["w1l"].shape[1]
    o_pad = prep["w2l"].shape[1]
    return pl.pallas_call(
        _fused_sagenet_kernel,
        out_shape=jax.ShapeDtypeStruct((n_pad, o_pad), jnp.float32),
        grid=(1,),
        in_specs=[
            pl.BlockSpec((n_pad, n_pad), lambda i: (0, 0)),
            pl.BlockSpec((n_pad, f_pad), lambda i: (0, 0)),
            pl.BlockSpec((f_pad, h_pad), lambda i: (0, 0)),
            pl.BlockSpec((f_pad, h_pad), lambda i: (0, 0)),
            pl.BlockSpec((1, h_pad), lambda i: (0, 0)),
            pl.BlockSpec((h_pad, o_pad), lambda i: (0, 0)),
            pl.BlockSpec((h_pad, o_pad), lambda i: (0, 0)),
            pl.BlockSpec((1, o_pad), lambda i: (0, 0)),
        ],
        out_specs=pl.BlockSpec((n_pad, o_pad), lambda i: (0, 0)),
        compiler_params=pltpu.CompilerParams(
            dimension_semantics=("arbitrary",),
            vmem_limit_bytes=_VMEM_LIMIT_BYTES),
    )(a_pad, x_pad, prep["w1l"], prep["w1r"], prep["b1"],
      prep["w2l"], prep["w2r"], prep["b2"])


@functools.partial(jax.jit, static_argnames=("tm", "tk"))
def _tiled_forward(prep, x_pad, a_pad, *, tm, tk):
    h = sage_conv(a_pad, x_pad, prep["w1l"], prep["w1r"], prep["b1"],
                  tm=tm, tk=tk, apply_relu=True, out_dtype=jnp.bfloat16)
    # dropout(p=0.5): identity in eval mode (see TODO above).
    return sage_conv(a_pad, h, prep["w2l"], prep["w2r"], prep["b2"],
                     tm=tm, tk=tk, apply_relu=False, out_dtype=jnp.float32)


# --------------------------------------------------------------------------- #
# Graph / parameter preparation
# --------------------------------------------------------------------------- #
def build_mean_adjacency(edge_index, num_nodes, n_pad):
    """Dense scatter-mean operator, zero-padded to n_pad, cast to bf16."""
    src, tgt = edge_index[0], edge_index[1]
    a = jnp.zeros((num_nodes, num_nodes), jnp.float32).at[tgt, src].add(1.0)
    deg = a.sum(axis=1, keepdims=True)
    a = a / jnp.maximum(deg, 1.0)                     # isolated nodes aggregate to 0
    a = jnp.pad(a, ((0, n_pad - num_nodes), (0, n_pad - num_nodes)))
    return a.astype(jnp.bfloat16)


def init_params(key, in_channels, hidden_channels, out_channels):
    k = jax.random.split(key, 4)
    s1 = 1.0 / jnp.sqrt(jnp.float32(in_channels))
    s2 = 1.0 / jnp.sqrt(jnp.float32(hidden_channels))
    return {
        "w1_l": jax.random.uniform(k[0], (in_channels, hidden_channels), jnp.float32, -s1, s1),
        "w1_r": jax.random.uniform(k[1], (in_channels, hidden_channels), jnp.float32, -s1, s1),
        "b1_l": jnp.zeros((1, hidden_channels), jnp.float32),
        "w2_l": jax.random.uniform(k[2], (hidden_channels, out_channels), jnp.float32, -s2, s2),
        "w2_r": jax.random.uniform(k[3], (hidden_channels, out_channels), jnp.float32, -s2, s2),
        "b2_l": jnp.zeros((1, out_channels), jnp.float32),
    }


def prepare_params(params):
    """Pad channel dims to multiples of 128 (lane-dense); weights bf16, biases f32."""
    f, h = params["w1_l"].shape
    o = params["w2_l"].shape[1]
    f_pad, h_pad, o_pad = _round_up(f, _LANE), _round_up(h, _LANE), _round_up(o, _LANE)

    def pad2(w, r, c):
        return jnp.pad(w, ((0, r - w.shape[0]), (0, c - w.shape[1])))

    return {
        "w1l": pad2(params["w1_l"], f_pad, h_pad).astype(jnp.bfloat16),
        "w1r": pad2(params["w1_r"], f_pad, h_pad).astype(jnp.bfloat16),
        "b1": pad2(params["b1_l"], 1, h_pad).astype(jnp.float32),
        "w2l": pad2(params["w2_l"], h_pad, o_pad).astype(jnp.bfloat16),
        "w2r": pad2(params["w2_r"], h_pad, o_pad).astype(jnp.bfloat16),
        "b2": pad2(params["b2_l"], 1, o_pad).astype(jnp.float32),
    }


def sagenet_forward(params, x, edge_index):
    """SAGENet.forward: conv1 -> relu -> dropout(eval: identity) -> conv2."""
    n, f = x.shape
    out_c = params["b2_l"].shape[1]
    f_pad = _round_up(f, _LANE)
    prep = prepare_params(params)

    n_pad_small = _round_up(n, _LANE)
    if n_pad_small <= _FUSED_MAX_NPAD:
        # Small graph: everything fits in VMEM -> single fused kernel, no HBM
        # round-trip for the hidden activation.
        n_pad = n_pad_small
        a_pad = build_mean_adjacency(edge_index, n, n_pad)
        x_pad = jnp.pad(x, ((0, n_pad - n), (0, f_pad - f))).astype(jnp.bfloat16)
        out = _fused_forward(prep, x_pad, a_pad)
    else:
        n_pad, tm, tk = _tiles_for(n)
        a_pad = build_mean_adjacency(edge_index, n, n_pad)
        x_pad = jnp.pad(x, ((0, n_pad - n), (0, f_pad - f))).astype(jnp.bfloat16)
        out = _tiled_forward(prep, x_pad, a_pad, tm=tm, tk=tk)
    return out[:n, :out_c]


def _reference_forward(params, x, edge_index):
    """Pure-JAX f32 reference for correctness checking."""
    n = x.shape[0]
    a = jnp.zeros((n, n), jnp.float32).at[edge_index[1], edge_index[0]].add(1.0)
    a = a / jnp.maximum(a.sum(axis=1, keepdims=True), 1.0)
    h = jnp.maximum((a @ x) @ params["w1_l"] + x @ params["w1_r"] + params["b1_l"], 0.0)
    return (a @ h) @ params["w2_l"] + h @ params["w2_r"] + params["b2_l"]


if __name__ == "__main__":
    key = jax.random.PRNGKey(0)
    k_x, k_src, k_tgt, k_p, k_x2, k_s2, k_t2 = jax.random.split(key, 7)

    # ---- small graph (fused single-kernel path) ----
    N, E, IN_C, HID_C, OUT_C = 16, 40, 8, 32, 4
    x = jax.random.normal(k_x, (N, IN_C), jnp.float32)
    edge_index = jnp.stack(
        [jax.random.randint(k_src, (E,), 0, N, jnp.int32),
         jax.random.randint(k_tgt, (E,), 0, N, jnp.int32)], axis=0)
    params = init_params(k_p, IN_C, HID_C, OUT_C)

    out = jax.block_until_ready(sagenet_forward(params, x, edge_index))
    assert out.shape == (N, OUT_C)
    ref = _reference_forward(params, x, edge_index)
    assert jnp.allclose(out, ref, atol=5e-2, rtol=5e-2), float(jnp.abs(out - ref).max())

    # ---- larger graph (tiled multi-step path with the (row, K) grid) ----
    N2, E2 = 1100, 4000
    x2 = jax.random.normal(k_x2, (N2, IN_C), jnp.float32)
    edge_index2 = jnp.stack(
        [jax.random.randint(k_s2, (E2,), 0, N2, jnp.int32),
         jax.random.randint(k_t2, (E2,), 0, N2, jnp.int32)], axis=0)
    out2 = jax.block_until_ready(sagenet_forward(params, x2, edge_index2))
    assert out2.shape == (N2, OUT_C)
    assert bool(jnp.isfinite(out2).all())

    print("KERNEL_OK")
</pallas_src>

<mosaic_0001>
module attributes {stable_mosaic.version = 11 : i64} {
  func.func @_fused_sagenet_kernel(%arg0: i32, %arg1: memref<128x128xbf16, #tpu.memory_space<vmem>>, %arg2: memref<128x128xbf16, #tpu.memory_space<vmem>>, %arg3: memref<128x128xbf16, #tpu.memory_space<vmem>>, %arg4: memref<128x128xbf16, #tpu.memory_space<vmem>>, %arg5: memref<1x128xf32, #tpu.memory_space<vmem>>, %arg6: memref<128x128xbf16, #tpu.memory_space<vmem>>, %arg7: memref<128x128xbf16, #tpu.memory_space<vmem>>, %arg8: memref<1x128xf32, #tpu.memory_space<vmem>>, %arg9: memref<128x128xf32, #tpu.memory_space<vmem>>) attributes {dimension_semantics = [#tpu.dimension_semantics<arbitrary>], iteration_bounds = array<i64: 1>, scalar_prefetch = 0 : i64, scratch_operands = 0 : i64, tpu.core_type = #tpu.core_type<tc>, window_params = [{pipeline_mode = #tpu.pipeline_mode<synchronous>, transform_indices = @transform_0, window_bounds = array<i64: 128, 128>}, {pipeline_mode = #tpu.pipeline_mode<synchronous>, transform_indices = @transform_1, window_bounds = array<i64: 128, 128>}, {pipeline_mode = #tpu.pipeline_mode<synchronous>, transform_indices = @transform_2, window_bounds = array<i64: 128, 128>}, {pipeline_mode = #tpu.pipeline_mode<synchronous>, transform_indices = @transform_3, window_bounds = array<i64: 128, 128>}, {pipeline_mode = #tpu.pipeline_mode<synchronous>, transform_indices = @transform_4, window_bounds = array<i64: 1, 128>}, {pipeline_mode = #tpu.pipeline_mode<synchronous>, transform_indices = @transform_5, window_bounds = array<i64: 128, 128>}, {pipeline_mode = #tpu.pipeline_mode<synchronous>, transform_indices = @transform_6, window_bounds = array<i64: 128, 128>}, {pipeline_mode = #tpu.pipeline_mode<synchronous>, transform_indices = @transform_7, window_bounds = array<i64: 1, 128>}, {pipeline_mode = #tpu.pipeline_mode<synchronous>, transform_indices = @transform_8, window_bounds = array<i64: 128, 128>}]} {
    %c0 = arith.constant 0 : index
    %c0_0 = arith.constant 0 : index
    %0 = vector.load %arg1[%c0, %c0_0] : memref<128x128xbf16, #tpu.memory_space<vmem>>, vector<128x128xbf16>
    %c0_1 = arith.constant 0 : index
    %c0_2 = arith.constant 0 : index
    %1 = vector.load %arg2[%c0_1, %c0_2] : memref<128x128xbf16, #tpu.memory_space<vmem>>, vector<128x128xbf16>
    %cst = arith.constant dense<0.000000e+00> : vector<128x128xf32>
    %2 = tpu.matmul %0, %1, %cst {dimension_numbers = #tpu.dot_dimension_numbers<[1], [0], [0], [1], [0, 0, 1, 1], [], []>} : vector<128x128xbf16>, vector<128x128xbf16>, vector<128x128xf32> -> vector<128x128xf32>
    %3 = arith.truncf %2 : vector<128x128xf32> to vector<128x128xbf16>
    %c0_3 = arith.constant 0 : index
    %c0_4 = arith.constant 0 : index
    %4 = vector.load %arg3[%c0_3, %c0_4] : memref<128x128xbf16, #tpu.memory_space<vmem>>, vector<128x128xbf16>
    %cst_5 = arith.constant dense<0.000000e+00> : vector<128x128xf32>
    %5 = tpu.matmul %3, %4, %cst_5 {dimension_numbers = #tpu.dot_dimension_numbers<[1], [0], [0], [1], [0, 0, 1, 1], [], []>} : vector<128x128xbf16>, vector<128x128xbf16>, vector<128x128xf32> -> vector<128x128xf32>
    %c0_6 = arith.constant 0 : index
    %c0_7 = arith.constant 0 : index
    %6 = vector.load %arg4[%c0_6, %c0_7] : memref<128x128xbf16, #tpu.memory_space<vmem>>, vector<128x128xbf16>
    %cst_8 = arith.constant dense<0.000000e+00> : vector<128x128xf32>
    %7 = tpu.matmul %1, %6, %cst_8 {dimension_numbers = #tpu.dot_dimension_numbers<[1], [0], [0], [1], [0, 0, 1, 1], [], []>} : vector<128x128xbf16>, vector<128x128xbf16>, vector<128x128xf32> -> vector<128x128xf32>
    %8 = arith.addf %5, %7 : vector<128x128xf32>
    %c0_9 = arith.constant 0 : index
    %c0_10 = arith.constant 0 : index
    %9 = vector.load %arg5[%c0_9, %c0_10] : memref<1x128xf32, #tpu.memory_space<vmem>>, vector<1x128xf32>
    %10 = vector.broadcast %9 : vector<1x128xf32> to vector<128x128xf32>
    %11 = arith.addf %8, %10 : vector<128x128xf32>
    %cst_11 = arith.constant 0.000000e+00 : f32
    %12 = vector.broadcast %cst_11 : f32 to vector<128x128xf32>
    %13 = arith.maximumf %11, %12 : vector<128x128xf32>
    %14 = arith.truncf %13 : vector<128x128xf32> to vector<128x128xbf16>
    %cst_12 = arith.constant dense<0.000000e+00> : vector<128x128xf32>
    %15 = tpu.matmul %0, %14, %cst_12 {dimension_numbers = #tpu.dot_dimension_numbers<[1], [0], [0], [1], [0, 0, 1, 1], [], []>} : vector<128x128xbf16>, vector<128x128xbf16>, vector<128x128xf32> -> vector<128x128xf32>
    %16 = arith.truncf %15 : vector<128x128xf32> to vector<128x128xbf16>
    %c0_13 = arith.constant 0 : index
    %c0_14 = arith.constant 0 : index
    %17 = vector.load %arg6[%c0_13, %c0_14] : memref<128x128xbf16, #tpu.memory_space<vmem>>, vector<128x128xbf16>
    %cst_15 = arith.constant dense<0.000000e+00> : vector<128x128xf32>
    %18 = tpu.matmul %16, %17, %cst_15 {dimension_numbers = #tpu.dot_dimension_numbers<[1], [0], [0], [1], [0, 0, 1, 1], [], []>} : vector<128x128xbf16>, vector<128x128xbf16>, vector<128x128xf32> -> vector<128x128xf32>
    %c0_16 = arith.constant 0 : index
    %c0_17 = arith.constant 0 : index
    %19 = vector.load %arg7[%c0_16, %c0_17] : memref<128x128xbf16, #tpu.memory_space<vmem>>, vector<128x128xbf16>
    %cst_18 = arith.constant dense<0.000000e+00> : vector<128x128xf32>
    %20 = tpu.matmul %14, %19, %cst_18 {dimension_numbers = #tpu.dot_dimension_numbers<[1], [0], [0], [1], [0, 0, 1, 1], [], []>} : vector<128x128xbf16>, vector<128x128xbf16>, vector<128x128xf32> -> vector<128x128xf32>
    %21 = arith.addf %18, %20 : vector<128x128xf32>
    %c0_19 = arith.constant 0 : index
    %c0_20 = arith.constant 0 : index
    %22 = vector.load %arg8[%c0_19, %c0_20] : memref<1x128xf32, #tpu.memory_space<vmem>>, vector<1x128xf32>
    %23 = vector.broadcast %22 : vector<1x128xf32> to vector<128x128xf32>
    %24 = arith.addf %21, %23 : vector<128x128xf32>
    %c0_21 = arith.constant 0 : index
    %c0_22 = arith.constant 0 : index
    %25 = vector.load %arg9[%c0_21, %c0_22] : memref<128x128xf32, #tpu.memory_space<vmem>>, vector<128x128xf32>
    tpu.vector_store %arg9[%c0_21, %c0_22], %24 {strides = array<i32>} : memref<128x128xf32, #tpu.memory_space<vmem>>, vector<128x128xf32>,
    return
  }
  func.func @transform_0(%arg0: i32) -> (i32, i32) {
    %c0_i32 = arith.constant 0 : i32
    %c0_i32_0 = arith.constant 0 : i32
    %c0_i32_1 = arith.constant 0 : i32
    return %c0_i32, %c0_i32_0 : i32, i32
  }
  func.func @transform_1(%arg0: i32) -> (i32, i32) {
    %c0_i32 = arith.constant 0 : i32
    %c0_i32_0 = arith.constant 0 : i32
    %c0_i32_1 = arith.constant 0 : i32
    return %c0_i32, %c0_i32_0 : i32, i32
  }
  func.func @transform_2(%arg0: i32) -> (i32, i32) {
    %c0_i32 = arith.constant 0 : i32
    %c0_i32_0 = arith.constant 0 : i32
    %c0_i32_1 = arith.constant 0 : i32
    return %c0_i32, %c0_i32_0 : i32, i32
  }
  func.func @transform_3(%arg0: i32) -> (i32, i32) {
    %c0_i32 = arith.constant 0 : i32
    %c0_i32_0 = arith.constant 0 : i32
    %c0_i32_1 = arith.constant 0 : i32
    return %c0_i32, %c0_i32_0 : i32, i32
  }
  func.func @transform_4(%arg0: i32) -> (i32, i32) {
    %c0_i32 = arith.constant 0 : i32
    %c0_i32_0 = arith.constant 0 : i32
    %c0_i32_1 = arith.constant 0 : i32
    return %c0_i32, %c0_i32_0 : i32, i32
  }
  func.func @transform_5(%arg0: i32) -> (i32, i32) {
    %c0_i32 = arith.constant 0 : i32
    %c0_i32_0 = arith.constant 0 : i32
    %c0_i32_1 = arith.constant 0 : i32
    return %c0_i32, %c0_i32_0 : i32, i32
  }
  func.func @transform_6(%arg0: i32) -> (i32, i32) {
    %c0_i32 = arith.constant 0 : i32
    %c0_i32_0 = arith.constant 0 : i32
    %c0_i32_1 = arith.constant 0 : i32
    return %c0_i32, %c0_i32_0 : i32, i32
  }
  func.func @transform_7(%arg0: i32) -> (i32, i32) {
    %c0_i32 = arith.constant 0 : i32
    %c0_i32_0 = arith.constant 0 : i32
    %c0_i32_1 = arith.constant 0 : i32
    return %c0_i32, %c0_i32_0 : i32, i32
  }
  func.func @transform_8(%arg0: i32) -> (i32, i32) {
    %c0_i32 = arith.constant 0 : i32
    %c0_i32_0 = arith.constant 0 : i32
    %c0_i32_1 = arith.constant 0 : i32
    return %c0_i32, %c0_i32_0 : i32, i32
  }
}

</mosaic_0001>

<bundles_post_ra>
// kernel: _fused_forward.1
= control target key start
LH: loop header
LB: loop body
LE: loop exit
PB: predicated region body
PF: predicated region fallthrough
CT: control target
= control target key end

     0   :  { %13 = vsyncpa [#allocation3], 0  ;;  %s1990_s0 = inlined_call_operand.hbm [shape: bf16[128,128], index: 0, kind: input, shape index: {}]   ;;  %s1991_s1 = inlined_call_operand.hbm [shape: bf16[128,128], index: 1, kind: input, shape index: {}]   ;;  %s1992_s2 = inlined_call_operand.hbm [shape: bf16[128,128], index: 2, kind: input, shape index: {}]   ;;  %s1993_s3 = inlined_call_operand.hbm [shape: bf16[128,128], index: 3, kind: input, shape index: {}]   ;;  %s1994_s4 = inlined_call_operand.hbm [shape: f32[1,128], index: 4, kind: input, shape index: {}]   ;;  %s1995_s5 = inlined_call_operand.hbm [shape: bf16[128,128], index: 5, kind: input, shape index: {}]   ;;  %s1996_s6 = inlined_call_operand.hbm [shape: bf16[128,128], index: 6, kind: input, shape index: {}]   ;;  %s1997_s7 = inlined_call_operand.vmem [shape: f32[1,128], index: 7, kind: input, shape index: {}]   ;;  %s1998_s8 = inlined_call_operand.hbm [shape: f32[128,128], index: 8, kind: output, shape index: {}]  }
   0x1   :  { %14 = vsyncpa [#allocation6], 0 }
   0x2   :  { %15 = vsyncpa [#allocation9], 0 }
   0x3   :  { %16 = vsyncpa [#allocation12], 0 }
   0x4   :  { %17 = vsyncpa [#allocation4], 0  ;;  %s1780_s27 = smov [#allocation5]   ;;  %s1781_s29 = smov [#allocation8]  }
   0x5   :  { %s35_s28 = sshll.u32 %s1780_s27, 4  ;;  %s59_s30 = sshll.u32 %s1781_s29, 4  ;;  %s36_s28 = int_to_ptr.vmem [resolvable:$true] %s35_s28  ;;  %s60_s30 = int_to_ptr.vmem [resolvable:$true] %s59_s30 }
   0x6   :  { %s1618_s9 = scalar_lea.vmem %s36_s28, 1024  ;;  %p1623_p1 = scmp.lt.s32.totalorder %s36_s28, %s36_s28 }
   0x7   :  { %p1619_p0 = scmp.ne.s32.totalorder %s36_s28, %s1618_s9  ;;  %p1624_p2 = scmp.lt.s32.totalorder %s1618_s9, %s1618_s9 }
   0x9   :  { %p1625_p3 = por %p1624_p2, %p1623_p1 }
   0xb   :  { %p1626_p4 = pnand %p1625_p3, %p1619_p0 }
   0xd   :  { %1629 = shalt.err (!%p1626_p4)
}
   0xe   :  { %s1782_s10 = smov 64   ;;  %s1783_s11 = smov 4  }
   0xf   :  { %41 = dma.hbm_to_vmem [thread:$0]  %s1991_s1, 1024, %s36_s28, [#allocation6], %s1782_s10, %s1782_s10, %s1783_s11  }
  0x10   :  { %s1638_s14 = scalar_lea.vmem %s60_s30, 1024  ;;  %p1643_p6 = scmp.lt.s32.totalorder %s60_s30, %s60_s30 }
  0x11   :  { %p1639_p5 = scmp.ne.s32.totalorder %s60_s30, %s1638_s14  ;;  %p1644_p7 = scmp.lt.s32.totalorder %s1638_s14, %s1638_s14 }
  0x13   :  { %p1645_p8 = por %p1644_p7, %p1643_p6 }
  0x15   :  { %p1646_p9 = pnand %p1645_p8, %p1639_p5 }
  0x17   :  { %1649 = shalt.err (!%p1646_p9)
}
  0x18   :  { %65 = dma.hbm_to_vmem [thread:$0]  %s1993_s3, 1024, %s60_s30, [#allocation9], %s1782_s10, %s1782_s10, %s1783_s11  }
  0x19   :  { %s1784_s17 = smov [#allocation11]   ;;  %s1785_s19 = smov [#allocation2]  }
  0x1a   :  { %s81_s18 = sshll.u32 %s1784_s17, 4  ;;  %s23_s20 = sshll.u32 %s1785_s19, 4  ;;  %s82_s18 = int_to_ptr.vmem [resolvable:$true] %s81_s18  ;;  %s24_s20 = int_to_ptr.vmem [resolvable:$true] %s23_s20 }
  0x1b   :  { %s1658_s1 = scalar_lea.vmem %s82_s18, 1024  ;;  %p1663_p11 = scmp.lt.s32.totalorder %s82_s18, %s82_s18 }
  0x1c   :  { %p1659_p10 = scmp.ne.s32.totalorder %s82_s18, %s1658_s1  ;;  %p1664_p12 = scmp.lt.s32.totalorder %s1658_s1, %s1658_s1 }
  0x1e   :  { %p1665_p13 = por %p1664_p12, %p1663_p11 }
  0x20   :  { %p1666_p0 = pnand %p1665_p13, %p1659_p10 }
  0x22   :  { %1669 = shalt.err (!%p1666_p0)
}
  0x23   :  { %87 = dma.hbm_to_vmem [thread:$0]  %s1995_s5, 1024, %s82_s18, [#allocation12], %s1782_s10, %s1782_s10, %s1783_s11  }
  0x24   :  { %s1678_s3 = scalar_lea.vmem %s24_s20, 1024  ;;  %p1683_p2 = scmp.lt.s32.totalorder %s24_s20, %s24_s20 }
  0x25   :  { %p1679_p1 = scmp.ne.s32.totalorder %s24_s20, %s1678_s3  ;;  %p1684_p3 = scmp.lt.s32.totalorder %s1678_s3, %s1678_s3 }
  0x27   :  { %p1685_p4 = por %p1684_p3, %p1683_p2 }
  0x29   :  { %p1686_p5 = pnand %p1685_p4, %p1679_p1 }
  0x2b   :  { %1689 = shalt.err (!%p1686_p5)
}
  0x2c   :  { %29 = dma.hbm_to_vmem [thread:$0]  %s1990_s0, 1024, %s24_s20, [#allocation3], %s1782_s10, %s1782_s10, %s1783_s11  }
  0x2d   :  { %s1786_s25 = smov [#allocation7]   ;;  %s1787_s27 = smov [#allocation10]  }
  0x2e   :  { %s47_s26 = sshll.u32 %s1786_s25, 4  ;;  %s72_s28 = sshll.u32 %s1787_s27, 4  ;;  %s48_s26 = int_to_ptr.vmem [resolvable:$true] %s47_s26  ;;  %s73_s28 = int_to_ptr.vmem [resolvable:$true] %s72_s28 }
  0x2f   :  { %s1698_s5 = scalar_lea.vmem %s48_s26, 1024  ;;  %p1703_p7 = scmp.lt.s32.totalorder %s48_s26, %s48_s26 }
  0x30   :  { %p1699_p6 = scmp.ne.s32.totalorder %s48_s26, %s1698_s5  ;;  %p1704_p8 = scmp.lt.s32.totalorder %s1698_s5, %s1698_s5 }
  0x32   :  { %p1705_p9 = por %p1704_p8, %p1703_p7 }
  0x34   :  { %p1706_p10 = pnand %p1705_p9, %p1699_p6 }
  0x36   :  { %1709 = shalt.err (!%p1706_p10)
}
  0x37   :  { %53 = dma.hbm_to_vmem [thread:$0]  %s1992_s2, 1024, %s48_s26, [#allocation6], %s1782_s10, %s1782_s10, %s1783_s11  }
  0x38   :  { %s1718_s0 = scalar_lea.vmem %s73_s28, 16  ;;  %s1722_s9 = scalar_lea.vmem %s73_s28, 32 }
  0x39   :  { %p1719_p11 = scmp.ne.s32.totalorder %s73_s28, %s1718_s0  ;;  %p1723_p12 = scmp.lt.s32.totalorder %s73_s28, %s73_s28 }
  0x3a   :  { %p1724_p13 = scmp.lt.s32.totalorder %s1722_s9, %s1718_s0 }
  0x3c   :  { %p1725_p0 = por %p1724_p13, %p1723_p12 }
  0x3e   :  { %p1726_p1 = pnand %p1725_p0, %p1719_p11 }
  0x40   :  { %1729 = shalt.err (!%p1726_p1)
}
  0x41   :  { %75 = dma.hbm_to_vmem [thread:$0]  %s1994_s4, 16, %s73_s28, [#allocation9]  }
  0x42   :  { %s1788_s14 = smov [#allocation13]  }
  0x43   :  { %s93_s15 = sshll.u32 %s1788_s14, 4  ;;  %s94_s15 = int_to_ptr.vmem [resolvable:$true] %s93_s15 }
  0x44   :  { %s1738_s16 = scalar_lea.vmem %s94_s15, 1024  ;;  %p1743_p3 = scmp.lt.s32.totalorder %s94_s15, %s94_s15 }
  0x45   :  { %p1739_p2 = scmp.ne.s32.totalorder %s94_s15, %s1738_s16  ;;  %p1744_p4 = scmp.lt.s32.totalorder %s1738_s16, %s1738_s16 }
  0x47   :  { %p1745_p5 = por %p1744_p4, %p1743_p3 }
  0x49   :  { %p1746_p6 = pnand %p1745_p5, %p1739_p2 }
  0x4b   :  { %1749 = shalt.err (!%p1746_p6)
}
  0x4c   :  { %99 = dma.hbm_to_vmem [thread:$0]  %s1996_s6, 1024, %s94_s15, [#allocation12], %s1782_s10, %s1782_s10, %s1783_s11  }
  0x4d   :  { %1770 = dma.done.wait [#allocation3], 1024  }
  0x4e   :  { %1771 = vsyncadd [#allocation3], 4294966272 }
  0x4f   :  { %1772 = dma.done.wait [#allocation6], 2048  }
  0x50   :  { %1773 = vsyncadd [#allocation6], 4294965248 }
  0x51   :  { %1774 = dma.done.wait [#allocation9], 1040  }
  0x52   :  { %1775 = vsyncadd [#allocation9], 4294966256 }
  0x53   :  { %1776 = dma.done.wait [#allocation12], 2048  }
  0x54   :  { %1777 = vsyncadd [#allocation12], 4294965248  ;;  %v1876_v0 = vld [vmem:[#allocation5 + $0x38] sm:$0xff]   ;;  %v1878_v1 = vld [vmem:[#allocation5 + $0x30] sm:$0xff]  }
  0x55   :  { %1358 = vmatprep.subr.bf16.mxu0 %v1876_v0  ;;  %v1883_v2 = vld [vmem:[#allocation5 + $0x28] sm:$0xff]   ;;  %v1885_v3 = vld [vmem:[#allocation5 + $0x20] sm:$0xff]   ;;  %v1894_v6 = vld [vmem:[#allocation5 + $0x18] sm:$0xff]  }
  0x56   :  { %1359 = vmatpush3.bf16.msra.mxu0 %v1876_v0  ;;  %v1569_v4 = vld [vmem:[#allocation5] sm:$0xff]   ;;  %v1897_v7 = vld [vmem:[#allocation5 + $0x10] sm:$0xff]   ;;  %v1578_v8 = vld [vmem:[#allocation8 + $0x38] sm:$0xff]  }
  0x57   :  { %1360 = vmatprep.subr.bf16.mxu0 %v1878_v1  ;;  %v1889_v5 = vld [vmem:[#allocation2] sm:$0xff]   ;;  %1406 = vmatprep.mubr.bf16.mxu1 %v1569_v4  ;;  %v1579_v9 = vld [vmem:[#allocation8 + $0x30] sm:$0xff]   ;;  %v1568_v10 = vld [vmem:[#allocation5 + $0x8] sm:$0xff]  }
  0x58   :  { %1374 = vmatprep.mubr.bf16.mxu0 %v1889_v5  ;;  %1390 = vmatprep.subr.bf16.mxu1 %v1578_v8  ;;  %v1581_v11 = vld [vmem:[#allocation8 + $0x28] sm:$0xff]   ;;  %v1583_v12 = vld [vmem:[#allocation8 + $0x20] sm:$0xff]   ;;  %v1580_v13 = vld [vmem:[#allocation7 + $0x38] sm:$0xff]  }
  0x59   :  { %1391 = vmatpush3.bf16.msra.mxu1 %v1578_v8  ;;  %v1903_v14 = vld [vmem:[#allocation2 + $0x8] sm:$0xff]   ;;  %v1585_v15 = vld [vmem:[#allocation8 + $0x18] sm:$0xff]   ;;  %v1905_v16 = vld [vmem:[#allocation2 + $0x10] sm:$0xff]  }
  0x5a   :  { %1361 = vmatpush3.bf16.msra.mxu0 %v1878_v1  ;;  %1392 = vmatprep.subr.bf16.mxu1 %v1579_v9  ;;  %v1582_v17 = vld [vmem:[#allocation7 + $0x30] sm:$0xff]   ;;  %v1584_v19 = vld [vmem:[#allocation7 + $0x28] sm:$0xff]   ;;  %v1909_v21 = vld [vmem:[#allocation2 + $0x18] sm:$0xff]  }
  0x5b   :  { %1362 = vmatprep.subr.bf16.mxu0 %v1883_v2  ;;  %v1587_v18 = vld [vmem:[#allocation8 + $0x10] sm:$0xff]   ;;  %v1589_v20 = vld [vmem:[#allocation8 + $0x8] sm:$0xff]   ;;  %v1911_v22 = vld [vmem:[#allocation2 + $0x20] sm:$0xff]  }
  0x5c   :  { %v1586_v23 = vld [vmem:[#allocation7 + $0x20] sm:$0xff]   ;;  %v1588_v24 = vld [vmem:[#allocation7 + $0x18] sm:$0xff]   ;;  %v1915_v25 = vld [vmem:[#allocation2 + $0x28] sm:$0xff]  }
  0x5d   :  { %1393 = vmatpush3.bf16.msra.mxu1 %v1579_v9  ;;  %v1917_v26 = vld [vmem:[#allocation2 + $0x30] sm:$0xff]   ;;  %v1921_v28 = vld [vmem:[#allocation2 + $0x38] sm:$0xff]   ;;  %v1591_v29 = vld [vmem:[#allocation8] sm:$0xff]  }
  0x5e   :  { %1363 = vmatpush3.bf16.msra.mxu0 %v1883_v2  ;;  %1394 = vmatprep.subr.bf16.mxu1 %v1581_v11  ;;  %v1590_v27 = vld [vmem:[#allocation7 + $0x10] sm:$0xff]   ;;  %v1592_v30 = vld [vmem:[#allocation7 + $0x8] sm:$0xff]   ;;  %v1593_v31 = vld [vmem:[#allocation7] sm:$0xff]  }
  0x5f   :  { %1364 = vmatprep.subr.bf16.mxu0 %v1885_v3  ;;  %v1594_v32 = vld [vmem:[#allocation13 + $0x38] sm:$0xff]   ;;  %v1595_v40 = vld [vmem:[#allocation13 + $0x30] sm:$0xff]   ;;  %v1596_v43 = vld [vmem:[#allocation13 + $0x28] sm:$0xff]  }
  0x60   :  { %v1597_v48 = vld [vmem:[#allocation13 + $0x20] sm:$0xff]   ;;  %v1598_v60 = vld [vmem:[#allocation13 + $0x18] sm:$0xff]   ;;  %v1599_v61 = vld [vmem:[#allocation13 + $0x10] sm:$0xff]  }
  0x61   :  { %1395 = vmatpush3.bf16.msra.mxu1 %v1581_v11  ;;  %v1600_v62 = vld [vmem:[#allocation13 + $0x8] sm:$0xff]   ;;  %v1601_v63 = vld [vmem:[#allocation13] sm:$0xff]  }
  0x62   :  { %1365 = vmatpush3.bf16.msra.mxu0 %v1885_v3  ;;  %1396 = vmatprep.subr.bf16.mxu1 %v1583_v12 }
  0x63   :  { %1366 = vmatprep.subr.bf16.mxu0 %v1894_v6 }
  0x65   :  { %1397 = vmatpush3.bf16.msra.mxu1 %v1583_v12 }
  0x66   :  { %1367 = vmatpush3.bf16.msra.mxu0 %v1894_v6  ;;  %1398 = vmatprep.subr.bf16.mxu1 %v1585_v15 }
  0x67   :  { %1368 = vmatprep.subr.bf16.mxu0 %v1897_v7 }
  0x69   :  { %1399 = vmatpush3.bf16.msra.mxu1 %v1585_v15  ;;  %v1931_v15 = vld [vmem:[#allocation10] ss:$0 sm:$0xff] }
  0x6a   :  { %1369 = vmatpush3.bf16.msra.mxu0 %v1897_v7  ;;  %1400 = vmatprep.subr.bf16.mxu1 %v1587_v18 }
  0x6b   :  { %1370 = vmatprep.subr.bf16.mxu0 %v1568_v10 }
  0x6d   :  { %1401 = vmatpush3.bf16.msra.mxu1 %v1587_v18 }
  0x6e   :  { %1371 = vmatpush3.bf16.msra.mxu0 %v1568_v10  ;;  %1402 = vmatprep.subr.bf16.mxu1 %v1589_v20 }
  0x6f   :  { %1372 = vmatprep.subr.bf16.mxu0 %v1569_v4 }
  0x71   :  { %1403 = vmatpush3.bf16.msra.mxu1 %v1589_v20 }
  0x72   :  { %1373 = vmatpush3.bf16.msra.mxu0 %v1569_v4  ;;  %1404 = vmatprep.subr.bf16.mxu1 %v1591_v29 }
  0x73   :  { %1422 = vmatprep.subr.bf16.mxu0 %v1580_v13 }
  0x75   :  { %1375 = vmatmul.mubr.bf16.vlgmr.msra.gmra.mxu0 %v1903_v14  ;;  %1405 = vmatpush3.bf16.msra.mxu1 %v1591_v29 }
  0x76   :  { %1378 = vmatprep.mubr.bf16.mxu0 %v1905_v16  ;;  %1423 = vmatpush3.bf16.msra.mxu0 %v1580_v13 }
  0x77   :  { %1424 = vmatprep.subr.bf16.mxu0 %v1582_v17 }
  0x78   :  { %1407 = vmatmul.mubr.bf16.vlgmr.msra.gmra.mxu1 %v1568_v10 }
  0x79   :  { %1410 = vmatprep.mubr.bf16.mxu1 %v1897_v7 }
  0x7a   :  { %1425 = vmatpush3.bf16.msra.mxu0 %v1582_v17 }
  0x7b   :  { %1426 = vmatprep.subr.bf16.mxu0 %v1584_v19 }
  0x7d   :  { %1379 = vmatmul.mubr.bf16.gmra.mxu0 %v1909_v21 }
  0x7e   :  { %1382 = vmatprep.mubr.bf16.mxu0 %v1911_v22  ;;  %1427 = vmatpush3.bf16.msra.mxu0 %v1584_v19 }
  0x7f   :  { %1428 = vmatprep.subr.bf16.mxu0 %v1586_v23 }
  0x80   :  { %1411 = vmatmul.mubr.bf16.gmra.mxu1 %v1894_v6 }
  0x81   :  { %1414 = vmatprep.mubr.bf16.mxu1 %v1885_v3 }
  0x82   :  { %1429 = vmatpush3.bf16.msra.mxu0 %v1586_v23 }
  0x83   :  { %1430 = vmatprep.subr.bf16.mxu0 %v1588_v24 }
  0x85   :  { %1383 = vmatmul.mubr.bf16.gmra.mxu0 %v1915_v25 }
  0x86   :  { %1386 = vmatprep.mubr.bf16.mxu0 %v1917_v26  ;;  %1431 = vmatpush3.bf16.msra.mxu0 %v1588_v24 }
  0x87   :  { %1432 = vmatprep.subr.bf16.mxu0 %v1590_v27 }
  0x88   :  { %1415 = vmatmul.mubr.bf16.gmra.mxu1 %v1883_v2 }
  0x89   :  { %1418 = vmatprep.mubr.bf16.mxu1 %v1878_v1 }
  0x8a   :  { %1433 = vmatpush3.bf16.msra.mxu0 %v1590_v27 }
  0x8b   :  { %1434 = vmatprep.subr.bf16.mxu0 %v1592_v30 }
  0x8d   :  { %1387 = vmatmul.mubr.bf16.gmra.mxu0 %v1921_v28 }
  0x8e   :  { %1435 = vmatpush3.bf16.msra.mxu0 %v1592_v30 }
  0x8f   :  { %1436 = vmatprep.subr.bf16.mxu0 %v1593_v31 }
  0x90   :  { %1419 = vmatmul.mubr.bf16.gmra.mxu1 %v1876_v0 }
  0x91   :  { %1470 = vmatprep.mubr.bf16.mxu1 %v1889_v5 }
  0x92   :  { %1437 = vmatpush3.bf16.msra.mxu0 %v1593_v31 }
  0x93   :  { %1486 = vmatprep.subr.bf16.mxu0 %v1594_v32 }
 0x135   :  { %v1376_v33 = vpop.f32.mrf.mxu0 }
 0x137   :  { %v286_v34 = vpop.f32.mrf.mxu0 }
 0x138   :  { %v1408_v0 = vpop.f32.mrf.mxu1 }
 0x139   :  { %v1377_v35 = vpop.f32.mrf.mxu0 }
 0x13a   :  { %v350_v38 = vpack.c.bf16 %v1377_v35, %v1376_v33  ;;  %v471_v1 = vpop.f32.mrf.mxu1 }
 0x13b   :  { %v289_v36 = vpop.f32.mrf.mxu0 }
 0x13c   :  { %v349_v37 = vpack.c.bf16 %v289_v36, %v286_v34  ;;  %v1409_v2 = vpop.f32.mrf.mxu1 }
 0x13d   :  { %v1380_v39 = vpop.f32.mrf.mxu0 }
 0x13e   :  { %1438 = vmatprep.mubr.bf16.mxu0 %v349_v37  ;;  %v474_v3 = vpop.f32.mrf.mxu1 }
 0x13f   :  { %v302_v41 = vpop.f32.mrf.mxu0  ;;  %1439 = vmatmul.mubr.bf16.vlgmr.msra.gmra.mxu0 %v350_v38 }
 0x140   :  { %1487 = vmatpush3.bf16.msra.mxu0 %v1594_v32  ;;  %v1412_v4 = vpop.f32.mrf.mxu1 }
 0x141   :  { %v1381_v42 = vpop.f32.mrf.mxu0  ;;  %1488 = vmatprep.subr.bf16.mxu0 %v1595_v40 }
 0x142   :  { %v352_v46 = vpack.c.bf16 %v1381_v42, %v1380_v39  ;;  %v487_v5 = vpop.f32.mrf.mxu1 }
 0x143   :  { %v305_v44 = vpop.f32.mrf.mxu0 }
 0x144   :  { %v351_v45 = vpack.c.bf16 %v305_v44, %v302_v41  ;;  %1489 = vmatpush3.bf16.msra.mxu0 %v1595_v40  ;;  %v1413_v6 = vpop.f32.mrf.mxu1 }
 0x145   :  { %v1384_v47 = vpop.f32.mrf.mxu0  ;;  %1490 = vmatprep.subr.bf16.mxu0 %v1596_v43 }
 0x146   :  { %1442 = vmatprep.mubr.bf16.mxu0 %v351_v45  ;;  %v490_v7 = vpop.f32.mrf.mxu1 }
 0x147   :  { %v318_v49 = vpop.f32.mrf.mxu0  ;;  %1443 = vmatmul.mubr.bf16.gmra.mxu0 %v352_v46 }
 0x148   :  { %1491 = vmatpush3.bf16.msra.mxu0 %v1596_v43  ;;  %v1416_v10 = vpop.f32.mrf.mxu1 }
 0x149   :  { %v1385_v50 = vpop.f32.mrf.mxu0  ;;  %1492 = vmatprep.subr.bf16.mxu0 %v1597_v48 }
 0x14a   :  { %v354_v53 = vpack.c.bf16 %v1385_v50, %v1384_v47  ;;  %v503_v19 = vpop.f32.mrf.mxu1 }
 0x14b   :  { %v321_v51 = vpop.f32.mrf.mxu0 }
 0x14c   :  { %v353_v52 = vpack.c.bf16 %v321_v51, %v318_v49  ;;  %1493 = vmatpush3.bf16.msra.mxu0 %v1597_v48  ;;  %v1417_v33 = vpop.f32.mrf.mxu1 }
 0x14d   :  { %v1388_v54 = vpop.f32.mrf.mxu0  ;;  %1494 = vmatprep.subr.bf16.mxu0 %v1598_v60 }
 0x14e   :  { %1446 = vmatprep.mubr.bf16.mxu0 %v353_v52  ;;  %v506_v44 = vpop.f32.mrf.mxu1 }
 0x14f   :  { %v334_v55 = vpop.f32.mrf.mxu0  ;;  %1447 = vmatmul.mubr.bf16.gmra.mxu0 %v354_v53 }
 0x150   :  { %1495 = vmatpush3.bf16.msra.mxu0 %v1598_v60  ;;  %v1420_v52 = vpop.f32.mrf.mxu1 }
 0x151   :  { %v1389_v56 = vpop.f32.mrf.mxu0  ;;  %1496 = vmatprep.subr.bf16.mxu0 %v1599_v61 }
 0x152   :  { %v356_v59 = vpack.c.bf16 %v1389_v56, %v1388_v54 }
 0x153   :  { %v337_v57 = vpop.f32.mrf.mxu0 }
 0x154   :  { %v355_v58 = vpack.c.bf16 %v337_v57, %v334_v55  ;;  %1497 = vmatpush3.bf16.msra.mxu0 %v1599_v61 }
 0x155   :  { %1498 = vmatprep.subr.bf16.mxu0 %v1600_v62 }
 0x156   :  { %1450 = vmatprep.mubr.bf16.mxu0 %v355_v58 }
 0x157   :  { %1451 = vmatmul.mubr.bf16.gmra.mxu0 %v356_v59 }
 0x158   :  { %1499 = vmatpush3.bf16.msra.mxu0 %v1600_v62  ;;  %v519_v62 = vpop.f32.mrf.mxu1 }
 0x159   :  { %1500 = vmatprep.subr.bf16.mxu0 %v1601_v63 }
 0x15c   :  { %1501 = vmatpush3.bf16.msra.mxu0 %v1601_v63 }
 0x1ff   :  { %v1440_v8 = vpop.f32.mrf.mxu0 }
 0x200   :  { %v625_v12 = vadd.f32 %v1440_v8, %v1408_v0 }
 0x201   :  { %v616_v9 = vpop.f32.mrf.mxu0 }
 0x202   :  { %v617_v11 = vadd.f32 %v616_v9, %v471_v1  ;;  %v688_v27 = vadd.f32 %v1931_v15, %v625_v12  ;;  %v1421_v9 = vpop.f32.mrf.mxu1 }
 0x203   :  { %v1441_v13 = vpop.f32.mrf.mxu0 }
 0x204   :  { %v628_v17 = vadd.f32 %v1441_v13, %v1409_v2  ;;  %v686_v20 = vadd.f32 %v1931_v15, %v617_v11  ;;  %v704_v37 = vmax.f32 %v688_v27, 0.0 }
 0x205   :  { %v619_v18 = vpop.f32.mrf.mxu0 }
 0x206   :  { %v689_v23 = vadd.f32 %v1931_v15, %v628_v17  ;;  %v620_v24 = vadd.f32 %v619_v18, %v474_v3  ;;  %v702_v34 = vmax.f32 %v686_v20, 0.0 }
 0x207   :  { %v1444_v29 = vpop.f32.mrf.mxu0 }
 0x208   :  { %v687_v30 = vadd.f32 %v1931_v15, %v620_v24  ;;  %v705_v31 = vmax.f32 %v689_v23, 0.0  ;;  %v641_v38 = vadd.f32 %v1444_v29, %v1412_v4  ;;  %v522_v24 = vpop.f32.mrf.mxu1 }
 0x209   :  { %v632_v32 = vpop.f32.mrf.mxu0 }
 0x20a   :  { %v703_v35 = vmax.f32 %v687_v30, 0.0  ;;  %v633_v36 = vadd.f32 %v632_v32, %v487_v5  ;;  %v1939_v42 = vpack.c.bf16 %v705_v31, %v704_v37  ;;  %v692_v48 = vadd.f32 %v1931_v15, %v641_v38 }
 0x20b   :  { %v1445_v39 = vpop.f32.mrf.mxu0 }
 0x20c   :  { %v644_v40 = vadd.f32 %v1445_v39, %v1413_v6  ;;  %v1937_v41 = vpack.c.bf16 %v703_v35, %v702_v34  ;;  %v690_v45 = vadd.f32 %v1931_v15, %v633_v36  ;;  %v708_v57 = vmax.f32 %v692_v48, 0.0 }
 0x20d   :  { %v635_v43 = vpop.f32.mrf.mxu0 }
 0x20e   :  { %v693_v46 = vadd.f32 %v1931_v15, %v644_v40  ;;  %v636_v47 = vadd.f32 %v635_v43, %v490_v7  ;;  %1502 = vmatprep.mubr.bf16.mxu0 %v1937_v41  ;;  %v706_v54 = vmax.f32 %v690_v45, 0.0  ;;  %v1603_v40 = vld [vmem:[#allocation11 + $0x30] sm:$0xff]  }
 0x20f   :  { %v1448_v49 = vpop.f32.mrf.mxu0  ;;  %1503 = vmatmul.mubr.bf16.vlgmr.msra.gmra.mxu0 %v1939_v42 }
 0x210   :  { %v691_v50 = vadd.f32 %v1931_v15, %v636_v47  ;;  %v709_v51 = vmax.f32 %v693_v46, 0.0  ;;  %v657_v58 = vadd.f32 %v1448_v49, %v1416_v10 }
 0x211   :  { %v648_v53 = vpop.f32.mrf.mxu0 }
 0x212   :  { %v707_v55 = vmax.f32 %v691_v50, 0.0  ;;  %v649_v56 = vadd.f32 %v648_v53, %v503_v19  ;;  %v721_v0 = vpack.c.bf16 %v709_v51, %v708_v57  ;;  %v696_v4 = vadd.f32 %v1931_v15, %v657_v58 }
 0x213   :  { %v1449_v59 = vpop.f32.mrf.mxu0 }
 0x214   :  { %v660_v60 = vadd.f32 %v1449_v59, %v1417_v33  ;;  %v720_v61 = vpack.c.bf16 %v707_v55, %v706_v54  ;;  %v694_v1 = vadd.f32 %v1931_v15, %v649_v56  ;;  %v712_v17 = vmax.f32 %v696_v4, 0.0 }
 0x215   :  { %v651_v63 = vpop.f32.mrf.mxu0 }
 0x216   :  { %v697_v2 = vadd.f32 %v1931_v15, %v660_v60  ;;  %v652_v3 = vadd.f32 %v651_v63, %v506_v44  ;;  %1506 = vmatprep.mubr.bf16.mxu0 %v720_v61  ;;  %v710_v11 = vmax.f32 %v694_v1, 0.0 }
 0x217   :  { %v1452_v5 = vpop.f32.mrf.mxu0  ;;  %1507 = vmatmul.mubr.bf16.gmra.mxu0 %v721_v0 }
 0x218   :  { %v695_v6 = vadd.f32 %v1931_v15, %v652_v3  ;;  %v673_v7 = vadd.f32 %v1452_v5, %v1420_v52  ;;  %v713_v8 = vmax.f32 %v697_v2, 0.0 }
 0x219   :  { %v664_v10 = vpop.f32.mrf.mxu0 }
 0x21a   :  { %v711_v12 = vmax.f32 %v695_v6, 0.0  ;;  %v665_v13 = vadd.f32 %v664_v10, %v519_v62  ;;  %v700_v19 = vadd.f32 %v1931_v15, %v673_v7  ;;  %v723_v29 = vpack.c.bf16 %v713_v8, %v712_v17 }
 0x21b   :  { %v1453_v18 = vpop.f32.mrf.mxu0 }
 0x21c   :  { %v676_v20 = vadd.f32 %v1453_v18, %v1421_v9  ;;  %v722_v23 = vpack.c.bf16 %v711_v12, %v710_v11  ;;  %v698_v30 = vadd.f32 %v1931_v15, %v665_v13  ;;  %v716_v33 = vmax.f32 %v700_v19, 0.0  ;;  %v1969_v9 = vld [vmem:[%s1997_s7] ss:$0 sm:$0xff]  ;;  %s1789_s7 = smov [#allocation14]  }
 0x21d   :  { %v667_v27 = vpop.f32.mrf.mxu0  ;;  %s1197_s10 = sshll.u32 %s1789_s7, 4  ;;  %s1198_s10 = int_to_ptr.vmem [resolvable:$true] %s1197_s10 }
 0x21e   :  { %v701_v31 = vadd.f32 %v1931_v15, %v676_v20  ;;  %v668_v32 = vadd.f32 %v667_v27, %v522_v24  ;;  %1510 = vmatprep.mubr.bf16.mxu0 %v722_v23  ;;  %v714_v36 = vmax.f32 %v698_v30, 0.0  ;;  %s1750_s11 = scalar_lea.vmem %s1198_s10, 2048  ;;  %p1755_p8 = scmp.lt.s32.totalorder %s1198_s10, %s1198_s10 }
 0x21f   :  { %1511 = vmatmul.mubr.bf16.gmra.mxu0 %v723_v29  ;;  %p1751_p7 = scmp.ne.s32.totalorder %s1198_s10, %s1750_s11  ;;  %p1756_p9 = scmp.lt.s32.totalorder %s1750_s11, %s1750_s11 }
 0x220   :  { %v717_v34 = vmax.f32 %v701_v31, 0.0  ;;  %v699_v35 = vadd.f32 %v1931_v15, %v668_v32  ;;  %v1602_v15 = vld [vmem:[#allocation11 + $0x38] sm:$0xff]  }
 0x221   :  { %p1757_p10 = por %p1756_p9, %p1755_p8 }
 0x222   :  { %v715_v37 = vmax.f32 %v699_v35, 0.0  ;;  %v725_v38 = vpack.c.bf16 %v717_v34, %v716_v33 }
 0x223   :  { %p1758_p11 = pnand %p1757_p10, %p1751_p7 }
 0x224   :  { %1454 = vmatprep.subr.bf16.mxu1 %v725_v38  ;;  %v724_v39 = vpack.c.bf16 %v715_v37, %v714_v36 }
 0x225   :  { %1455 = vmatpush3.bf16.msra.mxu1 %v725_v38 }
 0x226   :  { %1456 = vmatprep.subr.bf16.mxu1 %v724_v39  ;;  %1514 = vmatprep.mubr.bf16.mxu0 %v724_v39 }
 0x227   :  { %1515 = vmatmul.mubr.bf16.gmra.mxu0 %v725_v38 }
 0x229   :  { %1457 = vmatpush3.bf16.msra.mxu1 %v724_v39 }
 0x22a   :  { %1458 = vmatprep.subr.bf16.mxu1 %v723_v29 }
 0x22d   :  { %1459 = vmatpush3.bf16.msra.mxu1 %v723_v29 }
 0x22e   :  { %1460 = vmatprep.subr.bf16.mxu1 %v722_v23 }
 0x231   :  { %1461 = vmatpush3.bf16.msra.mxu1 %v722_v23 }
 0x232   :  { %1462 = vmatprep.subr.bf16.mxu1 %v721_v0 }
 0x235   :  { %1463 = vmatpush3.bf16.msra.mxu1 %v721_v0 }
 0x236   :  { %1464 = vmatprep.subr.bf16.mxu1 %v720_v61 }
 0x239   :  { %1465 = vmatpush3.bf16.msra.mxu1 %v720_v61 }
 0x23a   :  { %1466 = vmatprep.subr.bf16.mxu1 %v1939_v42 }
 0x23d   :  { %1467 = vmatpush3.bf16.msra.mxu1 %v1939_v42 }
 0x23e   :  { %1468 = vmatprep.subr.bf16.mxu1 %v1937_v41 }
 0x241   :  { %1469 = vmatpush3.bf16.msra.mxu1 %v1937_v41  ;;  %v1604_v41 = vld [vmem:[#allocation11 + $0x28] sm:$0xff]  }
 0x242   :  { %1518 = vmatprep.subr.bf16.mxu1 %v1602_v15 }
 0x244   :  { %1471 = vmatmul.mubr.bf16.vlgmr.msra.gmra.mxu1 %v1903_v14  ;;  %v1605_v14 = vld [vmem:[#allocation11 + $0x20] sm:$0xff]  }
 0x245   :  { %1474 = vmatprep.mubr.bf16.mxu1 %v1905_v16  ;;  %1519 = vmatpush3.bf16.msra.mxu1 %v1602_v15  ;;  %v1606_v16 = vld [vmem:[#allocation11 + $0x18] sm:$0xff]  }
 0x246   :  { %1520 = vmatprep.subr.bf16.mxu1 %v1603_v40 }
 0x249   :  { %1521 = vmatpush3.bf16.msra.mxu1 %v1603_v40 }
 0x24a   :  { %1522 = vmatprep.subr.bf16.mxu1 %v1604_v41 }
 0x24c   :  { %1475 = vmatmul.mubr.bf16.gmra.mxu1 %v1909_v21  ;;  %v1607_v21 = vld [vmem:[#allocation11 + $0x10] sm:$0xff]  }
 0x24d   :  { %1478 = vmatprep.mubr.bf16.mxu1 %v1911_v22  ;;  %1523 = vmatpush3.bf16.msra.mxu1 %v1604_v41  ;;  %v1608_v22 = vld [vmem:[#allocation11 + $0x8] sm:$0xff]  }
 0x24e   :  { %1524 = vmatprep.subr.bf16.mxu1 %v1605_v14 }
 0x251   :  { %1525 = vmatpush3.bf16.msra.mxu1 %v1605_v14 }
 0x252   :  { %1526 = vmatprep.subr.bf16.mxu1 %v1606_v16 }
 0x254   :  { %1479 = vmatmul.mubr.bf16.gmra.mxu1 %v1915_v25  ;;  %v1609_v25 = vld [vmem:[#allocation11] sm:$0xff]  }
 0x255   :  { %1482 = vmatprep.mubr.bf16.mxu1 %v1917_v26  ;;  %1527 = vmatpush3.bf16.msra.mxu1 %v1606_v16 }
 0x256   :  { %1528 = vmatprep.subr.bf16.mxu1 %v1607_v21 }
 0x259   :  { %1529 = vmatpush3.bf16.msra.mxu1 %v1607_v21 }
 0x25a   :  { %1530 = vmatprep.subr.bf16.mxu1 %v1608_v22 }
 0x25c   :  { %1483 = vmatmul.mubr.bf16.gmra.mxu1 %v1921_v28 }
 0x25d   :  { %1531 = vmatpush3.bf16.msra.mxu1 %v1608_v22 }
 0x25e   :  { %1532 = vmatprep.subr.bf16.mxu1 %v1609_v25 }
 0x261   :  { %1533 = vmatpush3.bf16.msra.mxu1 %v1609_v25 }
 0x2cf   :  { %v1504_v0 = vpop.f32.mrf.mxu0 }
 0x2d1   :  { %v945_v1 = vpop.f32.mrf.mxu0 }
 0x2d3   :  { %v1505_v2 = vpop.f32.mrf.mxu0 }
 0x2d5   :  { %v948_v3 = vpop.f32.mrf.mxu0 }
 0x2d7   :  { %v1508_v4 = vpop.f32.mrf.mxu0 }
 0x2d9   :  { %v961_v5 = vpop.f32.mrf.mxu0 }
 0x2db   :  { %v1509_v6 = vpop.f32.mrf.mxu0 }
 0x2dd   :  { %v964_v7 = vpop.f32.mrf.mxu0 }
 0x2df   :  { %v1512_v11 = vpop.f32.mrf.mxu0 }
 0x2e1   :  { %v977_v23 = vpop.f32.mrf.mxu0 }
 0x2e3   :  { %v1513_v33 = vpop.f32.mrf.mxu0 }
 0x2e5   :  { %v980_v15 = vpop.f32.mrf.mxu0 }
 0x2e7   :  { %v1516_v25 = vpop.f32.mrf.mxu0 }
 0x304   :  { %v1472_v26 = vpop.f32.mrf.mxu1 }
 0x306   :  { %v760_v28 = vpop.f32.mrf.mxu1 }
 0x308   :  { %v1473_v42 = vpop.f32.mrf.mxu1 }
 0x309   :  { %v824_v45 = vpack.c.bf16 %v1473_v42, %v1472_v26 }
 0x30a   :  { %v763_v43 = vpop.f32.mrf.mxu1 }
 0x30b   :  { %v823_v44 = vpack.c.bf16 %v763_v43, %v760_v28 }
 0x30c   :  { %v1476_v46 = vpop.f32.mrf.mxu1 }
 0x30d   :  { %1534 = vmatprep.mubr.bf16.mxu1 %v823_v44 }
 0x30e   :  { %v776_v47 = vpop.f32.mrf.mxu1  ;;  %1535 = vmatmul.mubr.bf16.vlgmr.msra.gmra.mxu1 %v824_v45 }
 0x310   :  { %v1477_v48 = vpop.f32.mrf.mxu1 }
 0x311   :  { %v826_v51 = vpack.c.bf16 %v1477_v48, %v1476_v46  ;;  %v993_v46 = vpop.f32.mrf.mxu0 }
 0x312   :  { %v779_v49 = vpop.f32.mrf.mxu1 }
 0x313   :  { %v825_v50 = vpack.c.bf16 %v779_v49, %v776_v47 }
 0x314   :  { %v1480_v52 = vpop.f32.mrf.mxu1 }
 0x315   :  { %1538 = vmatprep.mubr.bf16.mxu1 %v825_v50 }
 0x316   :  { %v792_v53 = vpop.f32.mrf.mxu1  ;;  %1539 = vmatmul.mubr.bf16.gmra.mxu1 %v826_v51 }
 0x318   :  { %v1481_v54 = vpop.f32.mrf.mxu1 }
 0x319   :  { %v828_v57 = vpack.c.bf16 %v1481_v54, %v1480_v52 }
 0x31a   :  { %v795_v55 = vpop.f32.mrf.mxu1 }
 0x31b   :  { %v827_v56 = vpack.c.bf16 %v795_v55, %v792_v53  ;;  %v1517_v53 = vpop.f32.mrf.mxu0 }
 0x31c   :  { %v1484_v58 = vpop.f32.mrf.mxu1 }
 0x31d   :  { %1542 = vmatprep.mubr.bf16.mxu1 %v827_v56 }
 0x31e   :  { %v808_v59 = vpop.f32.mrf.mxu1  ;;  %1543 = vmatmul.mubr.bf16.gmra.mxu1 %v828_v57 }
 0x320   :  { %v1485_v60 = vpop.f32.mrf.mxu1 }
 0x321   :  { %v830_v63 = vpack.c.bf16 %v1485_v60, %v1484_v58  ;;  %v996_v60 = vpop.f32.mrf.mxu0 }
 0x322   :  { %v811_v61 = vpop.f32.mrf.mxu1 }
 0x323   :  { %v829_v62 = vpack.c.bf16 %v811_v61, %v808_v59 }
 0x325   :  { %1546 = vmatprep.mubr.bf16.mxu1 %v829_v62 }
 0x326   :  { %1547 = vmatmul.mubr.bf16.gmra.mxu1 %v830_v63 }
 0x3ce   :  { %v1536_v8 = vpop.f32.mrf.mxu1 }
 0x3cf   :  { %v1099_v10 = vadd.f32 %v1536_v8, %v1504_v0 }
 0x3d0   :  { %v1090_v12 = vpop.f32.mrf.mxu1 }
 0x3d1   :  { %v1162_v13 = vadd.f32 %v1969_v9, %v1099_v10  ;;  %v1091_v17 = vadd.f32 %v1090_v12, %v945_v1 }
 0x3d2   :  { %v1537_v18 = vpop.f32.mrf.mxu1 }
 0x3d3   :  { %1178 = vst [vmem:[#allocation14 + $0x10] sm:$0xff] %v1162_v13  ;;  %v1160_v19 = vadd.f32 %v1969_v9, %v1091_v17  ;;  %v1102_v20 = vadd.f32 %v1537_v18, %v1505_v2 }
 0x3d4   :  { %v1093_v24 = vpop.f32.mrf.mxu1 }
 0x3d5   :  { %1176 = vst [vmem:[#allocation14] sm:$0xff] %v1160_v19  ;;  %v1163_v27 = vadd.f32 %v1969_v9, %v1102_v20  ;;  %v1094_v29 = vadd.f32 %v1093_v24, %v948_v3 }
 0x3d6   :  { %v1540_v30 = vpop.f32.mrf.mxu1 }
 0x3d7   :  { %1179 = vst [vmem:[#allocation14 + $0x18] sm:$0xff] %v1163_v27  ;;  %v1161_v31 = vadd.f32 %v1969_v9, %v1094_v29  ;;  %v1115_v32 = vadd.f32 %v1540_v30, %v1508_v4 }
 0x3d8   :  { %v1106_v34 = vpop.f32.mrf.mxu1 }
 0x3d9   :  { %1177 = vst [vmem:[#allocation14 + $0x8] sm:$0xff] %v1161_v31  ;;  %v1166_v35 = vadd.f32 %v1969_v9, %v1115_v32  ;;  %v1107_v36 = vadd.f32 %v1106_v34, %v961_v5 }
 0x3da   :  { %v1541_v37 = vpop.f32.mrf.mxu1 }
 0x3db   :  { %1182 = vst [vmem:[#allocation14 + $0x30] sm:$0xff] %v1166_v35  ;;  %v1164_v38 = vadd.f32 %v1969_v9, %v1107_v36  ;;  %v1118_v39 = vadd.f32 %v1541_v37, %v1509_v6 }
 0x3dc   :  { %v1109_v40 = vpop.f32.mrf.mxu1 }
 0x3dd   :  { %1180 = vst [vmem:[#allocation14 + $0x20] sm:$0xff] %v1164_v38  ;;  %v1167_v41 = vadd.f32 %v1969_v9, %v1118_v39  ;;  %v1110_v14 = vadd.f32 %v1109_v40, %v964_v7 }
 0x3de   :  { %v1544_v16 = vpop.f32.mrf.mxu1 }
 0x3df   :  { %1183 = vst [vmem:[#allocation14 + $0x38] sm:$0xff] %v1167_v41  ;;  %v1165_v21 = vadd.f32 %v1969_v9, %v1110_v14  ;;  %v1131_v22 = vadd.f32 %v1544_v16, %v1512_v11 }
 0x3e0   :  { %v1122_v26 = vpop.f32.mrf.mxu1 }
 0x3e1   :  { %1181 = vst [vmem:[#allocation14 + $0x28] sm:$0xff] %v1165_v21  ;;  %v1170_v28 = vadd.f32 %v1969_v9, %v1131_v22  ;;  %v1123_v42 = vadd.f32 %v1122_v26, %v977_v23 }
 0x3e2   :  { %v1545_v43 = vpop.f32.mrf.mxu1 }
 0x3e3   :  { %1186 = vst [vmem:[#allocation14 + $0x50] sm:$0xff] %v1170_v28  ;;  %v1168_v44 = vadd.f32 %v1969_v9, %v1123_v42  ;;  %v1134_v45 = vadd.f32 %v1545_v43, %v1513_v33 }
 0x3e4   :  { %v1125_v47 = vpop.f32.mrf.mxu1 }
 0x3e5   :  { %1184 = vst [vmem:[#allocation14 + $0x40] sm:$0xff] %v1168_v44  ;;  %v1171_v48 = vadd.f32 %v1969_v9, %v1134_v45  ;;  %v1126_v49 = vadd.f32 %v1125_v47, %v980_v15 }
 0x3e6   :  { %v1548_v50 = vpop.f32.mrf.mxu1 }
 0x3e7   :  { %1187 = vst [vmem:[#allocation14 + $0x58] sm:$0xff] %v1171_v48  ;;  %v1169_v51 = vadd.f32 %v1969_v9, %v1126_v49  ;;  %v1147_v52 = vadd.f32 %v1548_v50, %v1516_v25 }
 0x3e8   :  { %v1138_v54 = vpop.f32.mrf.mxu1 }
 0x3e9   :  { %1185 = vst [vmem:[#allocation14 + $0x48] sm:$0xff] %v1169_v51  ;;  %v1174_v55 = vadd.f32 %v1969_v9, %v1147_v52  ;;  %v1139_v56 = vadd.f32 %v1138_v54, %v993_v46 }
 0x3ea   :  { %v1549_v57 = vpop.f32.mrf.mxu1 }
 0x3eb   :  { %1190 = vst [vmem:[#allocation14 + $0x70] sm:$0xff] %v1174_v55  ;;  %v1172_v58 = vadd.f32 %v1969_v9, %v1139_v56  ;;  %v1150_v59 = vadd.f32 %v1549_v57, %v1517_v53 }
 0x3ec   :  { %v1141_v61 = vpop.f32.mrf.mxu1 }
 0x3ed   :  { %1188 = vst [vmem:[#allocation14 + $0x60] sm:$0xff] %v1172_v58  ;;  %v1175_v62 = vadd.f32 %v1969_v9, %v1150_v59  ;;  %v1142_v63 = vadd.f32 %v1141_v61, %v996_v60 }
 0x3ef   :  { %1191 = vst [vmem:[#allocation14 + $0x78] sm:$0xff] %v1175_v62  ;;  %v1173_v0 = vadd.f32 %v1969_v9, %v1142_v63 }
 0x3f1   :  { %1189 = vst [vmem:[#allocation14 + $0x68] sm:$0xff] %v1173_v0 }
 0x3f2   :  { %1761 = shalt.err (!%p1758_p11)
}
 0x3f3   :  { %s1790_s18 = smov 128   ;;  %s1791_s19 = smov 8  }
 0x3f4   :  { %1203 = dma.vmem_to_hbm [thread:$0]  %s1198_s10, 2048, %s1998_s8, [#allocation4], %s1790_s18, %s1790_s18, %s1791_s19  }
 0x3f5   :  { %1778 = dma.done.wait [#allocation4], 2048  }
 0x3f6   :  { %1779 = vsyncadd [#allocation4], 4294965248 }
 0x3f7   :  { %1207 = vsyncpa [#allocation3], 1 }
 0x3f8   :  { %1208 = vsyncpa [#allocation6], 1 }
 0x3f9   :  { %1209 = vsyncpa [#allocation9], 1 }
 0x3fa   :  { %1210 = vsyncpa [#allocation12], 1 }
 0x3fb   :  { %1211 = vsyncpa [#allocation4], 1 }

</bundles_post_ra>
